<compile_context>
chip_gen: v7x
topology: tpu7x:2x2x1
jax: 0.10.0
libtpu: 0.0.40
codegen_flags: <defaults>
</compile_context>

<pallas_src>
import functools

import jax
import jax.numpy as jnp
from jax import lax
from jax.experimental import pallas as pl
from jax.experimental.pallas import tpu as pltpu


def lstm_kernel(x_ref, wih_ref, whh_ref, b_ref, wout_ref, bout_ref,
                out_ref, h_scr, c_scr, *, total_steps, hidden):
    """One grid step processes a chunk of Tc timesteps with an in-kernel loop.

    x_ref:    (Tc, Bp, E)  bf16   current time chunk
    wih_ref:  (E, 4H)      bf16   W_ih^T
    whh_ref:  (H, 4H)      bf16   W_hh^T
    b_ref:    (1, 4H)      f32    b_ih + b_hh
    wout_ref: (H, O)       bf16   W_out^T
    bout_ref: (1, O)       f32
    out_ref:  (1, Bp, O)   f32
    h_scr/c_scr: (Bp, H)   f32    carried state across chunks
    """
    chunk = pl.program_id(0)

    @pl.when(chunk == 0)
    def _():
        h_scr[...] = jnp.zeros_like(h_scr)
        c_scr[...] = jnp.zeros_like(c_scr)

    Tc, Bp, _E = x_ref.shape
    H = hidden

    # Weights / bias loaded + broadcast once per chunk (hoisted out of the loop).
    wih = wih_ref[...]                                        # (E, 4H) bf16
    whh = whh_ref[...]                                        # (H, 4H) bf16
    bias = jnp.broadcast_to(b_ref[...], (Bp, 4 * H))          # (Bp, 4H) f32

    t0 = chunk * Tc

    def step(s, carry):
        h, c = carry                                          # f32 (Bp, H)
        x_t = x_ref[s]                                        # (Bp, E) bf16
        gates = (jnp.dot(x_t, wih, preferred_element_type=jnp.float32)
                 + jnp.dot(h.astype(jnp.bfloat16), whh,
                           preferred_element_type=jnp.float32)
                 + bias)                                      # (Bp, 4H) f32

        i_g = jax.nn.sigmoid(gates[:, 0 * H:1 * H])
        f_g = jax.nn.sigmoid(gates[:, 1 * H:2 * H])
        g_g = jnp.tanh(gates[:, 2 * H:3 * H])
        o_g = jax.nn.sigmoid(gates[:, 3 * H:4 * H])

        c_new = f_g * c + i_g * g_g
        h_new = o_g * jnp.tanh(c_new)

        # Mask steps beyond the true sequence length (padded tail chunk).
        valid = (t0 + s) < total_steps
        return jnp.where(valid, h_new, h), jnp.where(valid, c_new, c)

    h, c = lax.fori_loop(0, Tc, step, (h_scr[...], c_scr[...]),
                         unroll=(Tc <= 32))
    h_scr[...] = h
    c_scr[...] = c

    @pl.when(chunk == pl.num_programs(0) - 1)
    def _():
        out_ref[0] = (jnp.dot(h.astype(jnp.bfloat16), wout_ref[...],
                              preferred_element_type=jnp.float32)
                      + bout_ref[...]).astype(out_ref.dtype)


def lstm_model_forward(x, w_ih, w_hh, b_ih, b_hh, w_out, b_out,
                       *, time_chunk=128):
    """x: [T, B, E] float32. Returns [1, B, O] (matches PyTorch self.out(hid))."""
    T, B, E = x.shape
    H = w_ih.shape[0] // 4
    O = w_out.shape[0]

    # Pad batch up to a sublane multiple (>=8); padded rows are independent.
    Bp = max(8, ((B + 7) // 8) * 8)
    if Bp != B:
        x = jnp.pad(x, ((0, 0), (0, Bp - B), (0, 0)))

    # Chunk the time axis so large T still fits VMEM; pad T to full chunks
    # (padded steps are masked out inside the kernel).
    Tc = min(T, time_chunk)
    n_chunks = pl.cdiv(T, Tc)
    Tp = n_chunks * Tc
    if Tp != T:
        x = jnp.pad(x, ((0, Tp - T), (0, 0), (0, 0)))

    # bf16 matmul inputs, f32 accumulation / biases / state.
    x_bf = x.astype(jnp.bfloat16)                               # (Tp, Bp, E)
    wih_t = jnp.asarray(w_ih.T, jnp.bfloat16)                   # (E, 4H)
    whh_t = jnp.asarray(w_hh.T, jnp.bfloat16)                   # (H, 4H)
    b_comb = jnp.asarray((b_ih + b_hh)[None, :], jnp.float32)   # (1, 4H)
    wout_t = jnp.asarray(w_out.T, jnp.bfloat16)                 # (H, O)
    bout = jnp.asarray(b_out[None, :], jnp.float32)             # (1, O)

    kernel = functools.partial(lstm_kernel, total_steps=T, hidden=H)

    out = pl.pallas_call(
        kernel,
        out_shape=jax.ShapeDtypeStruct((1, Bp, O), jnp.float32),
        grid_spec=pltpu.PrefetchScalarGridSpec(
            num_scalar_prefetch=0,
            grid=(n_chunks,),
            in_specs=[
                pl.BlockSpec((Tc, Bp, E), lambda c: (c, 0, 0)),   # x chunk
                pl.BlockSpec((E, 4 * H), lambda c: (0, 0)),       # W_ih^T
                pl.BlockSpec((H, 4 * H), lambda c: (0, 0)),       # W_hh^T
                pl.BlockSpec((1, 4 * H), lambda c: (0, 0)),       # combined bias
                pl.BlockSpec((H, O), lambda c: (0, 0)),           # W_out^T
                pl.BlockSpec((1, O), lambda c: (0, 0)),           # b_out
            ],
            out_specs=pl.BlockSpec((1, Bp, O), lambda c: (0, 0, 0)),
            scratch_shapes=[
                pltpu.VMEM((Bp, H), jnp.float32),   # h (carried across chunks)
                pltpu.VMEM((Bp, H), jnp.float32),   # c
            ],
        ),
        compiler_params=pltpu.CompilerParams(
            dimension_semantics=("arbitrary",)),     # recurrence is sequential
    )(x_bf, wih_t, whh_t, b_comb, wout_t, bout)

    return out[:, :B, :]


def reference_forward(x, w_ih, w_hh, b_ih, b_hh, w_out, b_out):
    """Plain-JAX f32 reference matching torch nn.LSTM + Linear semantics."""
    T, B, E = x.shape
    H = w_hh.shape[1]

    def step(carry, x_t):
        h, c = carry
        gates = x_t @ w_ih.T + b_ih + h @ w_hh.T + b_hh
        i = jax.nn.sigmoid(gates[:, 0 * H:1 * H])
        f = jax.nn.sigmoid(gates[:, 1 * H:2 * H])
        g = jnp.tanh(gates[:, 2 * H:3 * H])
        o = jax.nn.sigmoid(gates[:, 3 * H:4 * H])
        c = f * c + i * g
        h = o * jnp.tanh(c)
        return (h, c), None

    h0 = jnp.zeros((B, H), jnp.float32)
    c0 = jnp.zeros((B, H), jnp.float32)
    (h, _), _ = jax.lax.scan(step, (h0, c0), x)
    return (h @ w_out.T + b_out)[None]   # (1, B, O)


if __name__ == "__main__":
    # Small shapes consistent with the module's forward.
    T, B, E, H, O = 8, 2, 16, 32, 8

    key = jax.random.PRNGKey(0)
    ks = jax.random.split(key, 7)
    bound = 1.0 / jnp.sqrt(H)   # PyTorch default init range U(-1/sqrt(H), 1/sqrt(H))

    x = jax.random.normal(ks[0], (T, B, E), jnp.float32)
    w_ih = jax.random.uniform(ks[1], (4 * H, E), jnp.float32, -bound, bound)
    w_hh = jax.random.uniform(ks[2], (4 * H, H), jnp.float32, -bound, bound)
    b_ih = jax.random.uniform(ks[3], (4 * H,), jnp.float32, -bound, bound)
    b_hh = jax.random.uniform(ks[4], (4 * H,), jnp.float32, -bound, bound)
    w_out = jax.random.uniform(ks[5], (O, H), jnp.float32, -bound, bound)
    b_out = jax.random.uniform(ks[6], (O,), jnp.float32, -bound, bound)

    out = lstm_model_forward(x, w_ih, w_hh, b_ih, b_hh, w_out, b_out)
    out = jax.block_until_ready(out)

    ref = reference_forward(x, w_ih, w_hh, b_ih, b_hh, w_out, b_out)
    assert out.shape == (1, B, O), out.shape
    # bf16 matmul inputs (f32 accumulation) => tolerance loosened vs pure-f32 ref.
    assert jnp.allclose(out, ref, atol=2e-2, rtol=2e-2), \
        float(jnp.max(jnp.abs(out - ref)))

    print("KERNEL_OK")
</pallas_src>

<mosaic_0001>
module attributes {stable_mosaic.version = 11 : i64} {
  func.func @lstm_kernel(%arg0: i32, %arg1: memref<8x8x16xbf16, #tpu.memory_space<vmem>>, %arg2: memref<16x128xbf16, #tpu.memory_space<vmem>>, %arg3: memref<32x128xbf16, #tpu.memory_space<vmem>>, %arg4: memref<1x128xf32, #tpu.memory_space<vmem>>, %arg5: memref<32x8xbf16, #tpu.memory_space<vmem>>, %arg6: memref<1x8xf32, #tpu.memory_space<vmem>>, %arg7: memref<1x8x8xf32, #tpu.memory_space<vmem>>, %arg8: memref<8x32xf32, #tpu.memory_space<vmem>>, %arg9: memref<8x32xf32, #tpu.memory_space<vmem>>) attributes {dimension_semantics = [#tpu.dimension_semantics<arbitrary>], iteration_bounds = array<i64: 1>, scalar_prefetch = 0 : i64, scratch_operands = 2 : i64, tpu.core_type = #tpu.core_type<tc>, window_params = [{transform_indices = @transform_0, window_bounds = array<i64: 8, 8, 16>}, {pipeline_mode = #tpu.pipeline_mode<synchronous>, transform_indices = @transform_1, window_bounds = array<i64: 16, 128>}, {pipeline_mode = #tpu.pipeline_mode<synchronous>, transform_indices = @transform_2, window_bounds = array<i64: 32, 128>}, {pipeline_mode = #tpu.pipeline_mode<synchronous>, transform_indices = @transform_3, window_bounds = array<i64: 1, 128>}, {pipeline_mode = #tpu.pipeline_mode<synchronous>, transform_indices = @transform_4, window_bounds = array<i64: 32, 8>}, {pipeline_mode = #tpu.pipeline_mode<synchronous>, transform_indices = @transform_5, window_bounds = array<i64: 1, 8>}, {pipeline_mode = #tpu.pipeline_mode<synchronous>, transform_indices = @transform_6, window_bounds = array<i64: 1, 8, 8>}]} {
    %c0_i32 = arith.constant 0 : i32
    %0 = arith.cmpi eq, %arg0, %c0_i32 : i32
    %1 = arith.extui %0 : i1 to i32
    %c0_i32_0 = arith.constant 0 : i32
    %2 = arith.cmpi ne, %1, %c0_i32_0 : i32
    scf.if %2 {
      %cst_81 = arith.constant 0.000000e+00 : f32
      %312 = vector.broadcast %cst_81 : f32 to vector<8x32xf32>
      %c0_82 = arith.constant 0 : index
      %c0_83 = arith.constant 0 : index
      %313 = vector.load %arg8[%c0_82, %c0_83] : memref<8x32xf32, #tpu.memory_space<vmem>>, vector<8x32xf32>
      tpu.vector_store %arg8[%c0_82, %c0_83], %312 {strides = array<i32>} : memref<8x32xf32, #tpu.memory_space<vmem>>, vector<8x32xf32>,
      %cst_84 = arith.constant 0.000000e+00 : f32
      %314 = vector.broadcast %cst_84 : f32 to vector<8x32xf32>
      %c0_85 = arith.constant 0 : index
      %c0_86 = arith.constant 0 : index
      %315 = vector.load %arg9[%c0_85, %c0_86] : memref<8x32xf32, #tpu.memory_space<vmem>>, vector<8x32xf32>
      tpu.vector_store %arg9[%c0_85, %c0_86], %314 {strides = array<i32>} : memref<8x32xf32, #tpu.memory_space<vmem>>, vector<8x32xf32>,
    } else {
    }
    %c0 = arith.constant 0 : index
    %c0_1 = arith.constant 0 : index
    %3 = vector.load %arg2[%c0, %c0_1] : memref<16x128xbf16, #tpu.memory_space<vmem>>, vector<16x128xbf16>
    %c0_2 = arith.constant 0 : index
    %c0_3 = arith.constant 0 : index
    %4 = vector.load %arg3[%c0_2, %c0_3] : memref<32x128xbf16, #tpu.memory_space<vmem>>, vector<32x128xbf16>
    %c0_4 = arith.constant 0 : index
    %c0_5 = arith.constant 0 : index
    %5 = vector.load %arg4[%c0_4, %c0_5] : memref<1x128xf32, #tpu.memory_space<vmem>>, vector<1x128xf32>
    %6 = vector.shape_cast %5 : vector<1x128xf32> to vector<1x128xf32>
    %7 = vector.broadcast %6 : vector<1x128xf32> to vector<8x128xf32>
    %c8_i32 = arith.constant 8 : i32
    %8 = arith.muli %arg0, %c8_i32 : i32
    %c0_6 = arith.constant 0 : index
    %c0_7 = arith.constant 0 : index
    %9 = vector.load %arg8[%c0_6, %c0_7] : memref<8x32xf32, #tpu.memory_space<vmem>>, vector<8x32xf32>
    %c0_8 = arith.constant 0 : index
    %c0_9 = arith.constant 0 : index
    %10 = vector.load %arg9[%c0_8, %c0_9] : memref<8x32xf32, #tpu.memory_space<vmem>>, vector<8x32xf32>
    %c0_i32_10 = arith.constant 0 : i32
    %11 = arith.index_cast %c0_i32_10 : i32 to index
    %c0_11 = arith.constant 0 : index
    %c0_12 = arith.constant 0 : index
    %12 = vector.load %arg1[%11, %c0_11, %c0_12] : memref<8x8x16xbf16, #tpu.memory_space<vmem>>, vector<1x8x16xbf16>
    %13 = vector.shape_cast %12 : vector<1x8x16xbf16> to vector<8x16xbf16>
    %cst = arith.constant dense<0.000000e+00> : vector<8x128xf32>
    %14 = tpu.matmul %13, %3, %cst {dimension_numbers = #tpu.dot_dimension_numbers<[1], [0], [0], [1], [0, 0, 1, 1], [], []>} : vector<8x16xbf16>, vector<16x128xbf16>, vector<8x128xf32> -> vector<8x128xf32>
    %15 = arith.truncf %9 : vector<8x32xf32> to vector<8x32xbf16>
    %cst_13 = arith.constant dense<0.000000e+00> : vector<8x128xf32>
    %16 = tpu.matmul %15, %4, %cst_13 {dimension_numbers = #tpu.dot_dimension_numbers<[1], [0], [0], [1], [0, 0, 1, 1], [], []>} : vector<8x32xbf16>, vector<32x128xbf16>, vector<8x128xf32> -> vector<8x128xf32>
    %17 = arith.addf %14, %16 : vector<8x128xf32>
    %18 = arith.addf %17, %7 : vector<8x128xf32>
    %19 = vector.extract_strided_slice %18 {offsets = [0, 0], sizes = [8, 32], strides = [1, 1]} : vector<8x128xf32> to vector<8x32xf32>
    %20 = arith.negf %19 : vector<8x32xf32>
    %21 = math.exp %20 : vector<8x32xf32>
    %cst_14 = arith.constant 1.000000e+00 : f32
    %22 = vector.broadcast %cst_14 : f32 to vector<8x32xf32>
    %23 = arith.addf %22, %21 : vector<8x32xf32>
    %24 = arith.divf %22, %23 : vector<8x32xf32>
    %25 = vector.extract_strided_slice %18 {offsets = [0, 32], sizes = [8, 32], strides = [1, 1]} : vector<8x128xf32> to vector<8x32xf32>
    %26 = arith.negf %25 : vector<8x32xf32>
    %27 = math.exp %26 : vector<8x32xf32>
    %cst_15 = arith.constant 1.000000e+00 : f32
    %28 = vector.broadcast %cst_15 : f32 to vector<8x32xf32>
    %29 = arith.addf %28, %27 : vector<8x32xf32>
    %30 = arith.divf %28, %29 : vector<8x32xf32>
    %31 = vector.extract_strided_slice %18 {offsets = [0, 64], sizes = [8, 32], strides = [1, 1]} : vector<8x128xf32> to vector<8x32xf32>
    %32 = math.tanh %31 : vector<8x32xf32>
    %33 = vector.extract_strided_slice %18 {offsets = [0, 96], sizes = [8, 32], strides = [1, 1]} : vector<8x128xf32> to vector<8x32xf32>
    %34 = arith.negf %33 : vector<8x32xf32>
    %35 = math.exp %34 : vector<8x32xf32>
    %cst_16 = arith.constant 1.000000e+00 : f32
    %36 = vector.broadcast %cst_16 : f32 to vector<8x32xf32>
    %37 = arith.addf %36, %35 : vector<8x32xf32>
    %38 = arith.divf %36, %37 : vector<8x32xf32>
    %39 = arith.mulf %30, %10 : vector<8x32xf32>
    %40 = arith.mulf %24, %32 : vector<8x32xf32>
    %41 = arith.addf %39, %40 : vector<8x32xf32>
    %42 = math.tanh %41 : vector<8x32xf32>
    %43 = arith.mulf %38, %42 : vector<8x32xf32>
    %44 = arith.addi %8, %c0_i32_10 : i32
    %c8_i32_17 = arith.constant 8 : i32
    %45 = arith.cmpi slt, %44, %c8_i32_17 : i32
    %46 = arith.select %45, %43, %9 : vector<8x32xf32>
    %47 = arith.select %45, %41, %10 : vector<8x32xf32>
    %c1_i32 = arith.constant 1 : i32
    %48 = arith.index_cast %c1_i32 : i32 to index
    %c0_18 = arith.constant 0 : index
    %c0_19 = arith.constant 0 : index
    %49 = vector.load %arg1[%48, %c0_18, %c0_19] : memref<8x8x16xbf16, #tpu.memory_space<vmem>>, vector<1x8x16xbf16>
    %50 = vector.shape_cast %49 : vector<1x8x16xbf16> to vector<8x16xbf16>
    %cst_20 = arith.constant dense<0.000000e+00> : vector<8x128xf32>
    %51 = tpu.matmul %50, %3, %cst_20 {dimension_numbers = #tpu.dot_dimension_numbers<[1], [0], [0], [1], [0, 0, 1, 1], [], []>} : vector<8x16xbf16>, vector<16x128xbf16>, vector<8x128xf32> -> vector<8x128xf32>
    %52 = arith.truncf %46 : vector<8x32xf32> to vector<8x32xbf16>
    %cst_21 = arith.constant dense<0.000000e+00> : vector<8x128xf32>
    %53 = tpu.matmul %52, %4, %cst_21 {dimension_numbers = #tpu.dot_dimension_numbers<[1], [0], [0], [1], [0, 0, 1, 1], [], []>} : vector<8x32xbf16>, vector<32x128xbf16>, vector<8x128xf32> -> vector<8x128xf32>
    %54 = arith.addf %51, %53 : vector<8x128xf32>
    %55 = arith.addf %54, %7 : vector<8x128xf32>
    %56 = vector.extract_strided_slice %55 {offsets = [0, 0], sizes = [8, 32], strides = [1, 1]} : vector<8x128xf32> to vector<8x32xf32>
    %57 = arith.negf %56 : vector<8x32xf32>
    %58 = math.exp %57 : vector<8x32xf32>
    %cst_22 = arith.constant 1.000000e+00 : f32
    %59 = vector.broadcast %cst_22 : f32 to vector<8x32xf32>
    %60 = arith.addf %59, %58 : vector<8x32xf32>
    %61 = arith.divf %59, %60 : vector<8x32xf32>
    %62 = vector.extract_strided_slice %55 {offsets = [0, 32], sizes = [8, 32], strides = [1, 1]} : vector<8x128xf32> to vector<8x32xf32>
    %63 = arith.negf %62 : vector<8x32xf32>
    %64 = math.exp %63 : vector<8x32xf32>
    %cst_23 = arith.constant 1.000000e+00 : f32
    %65 = vector.broadcast %cst_23 : f32 to vector<8x32xf32>
    %66 = arith.addf %65, %64 : vector<8x32xf32>
    %67 = arith.divf %65, %66 : vector<8x32xf32>
    %68 = vector.extract_strided_slice %55 {offsets = [0, 64], sizes = [8, 32], strides = [1, 1]} : vector<8x128xf32> to vector<8x32xf32>
    %69 = math.tanh %68 : vector<8x32xf32>
    %70 = vector.extract_strided_slice %55 {offsets = [0, 96], sizes = [8, 32], strides = [1, 1]} : vector<8x128xf32> to vector<8x32xf32>
    %71 = arith.negf %70 : vector<8x32xf32>
    %72 = math.exp %71 : vector<8x32xf32>
    %cst_24 = arith.constant 1.000000e+00 : f32
    %73 = vector.broadcast %cst_24 : f32 to vector<8x32xf32>
    %74 = arith.addf %73, %72 : vector<8x32xf32>
    %75 = arith.divf %73, %74 : vector<8x32xf32>
    %76 = arith.mulf %67, %47 : vector<8x32xf32>
    %77 = arith.mulf %61, %69 : vector<8x32xf32>
    %78 = arith.addf %76, %77 : vector<8x32xf32>
    %79 = math.tanh %78 : vector<8x32xf32>
    %80 = arith.mulf %75, %79 : vector<8x32xf32>
    %81 = arith.addi %8, %c1_i32 : i32
    %c8_i32_25 = arith.constant 8 : i32
    %82 = arith.cmpi slt, %81, %c8_i32_25 : i32
    %83 = arith.select %82, %80, %46 : vector<8x32xf32>
    %84 = arith.select %82, %78, %47 : vector<8x32xf32>
    %c2_i32 = arith.constant 2 : i32
    %85 = arith.index_cast %c2_i32 : i32 to index
    %c0_26 = arith.constant 0 : index
    %c0_27 = arith.constant 0 : index
    %86 = vector.load %arg1[%85, %c0_26, %c0_27] : memref<8x8x16xbf16, #tpu.memory_space<vmem>>, vector<1x8x16xbf16>
    %87 = vector.shape_cast %86 : vector<1x8x16xbf16> to vector<8x16xbf16>
    %cst_28 = arith.constant dense<0.000000e+00> : vector<8x128xf32>
    %88 = tpu.matmul %87, %3, %cst_28 {dimension_numbers = #tpu.dot_dimension_numbers<[1], [0], [0], [1], [0, 0, 1, 1], [], []>} : vector<8x16xbf16>, vector<16x128xbf16>, vector<8x128xf32> -> vector<8x128xf32>
    %89 = arith.truncf %83 : vector<8x32xf32> to vector<8x32xbf16>
    %cst_29 = arith.constant dense<0.000000e+00> : vector<8x128xf32>
    %90 = tpu.matmul %89, %4, %cst_29 {dimension_numbers = #tpu.dot_dimension_numbers<[1], [0], [0], [1], [0, 0, 1, 1], [], []>} : vector<8x32xbf16>, vector<32x128xbf16>, vector<8x128xf32> -> vector<8x128xf32>
    %91 = arith.addf %88, %90 : vector<8x128xf32>
    %92 = arith.addf %91, %7 : vector<8x128xf32>
    %93 = vector.extract_strided_slice %92 {offsets = [0, 0], sizes = [8, 32], strides = [1, 1]} : vector<8x128xf32> to vector<8x32xf32>
    %94 = arith.negf %93 : vector<8x32xf32>
    %95 = math.exp %94 : vector<8x32xf32>
    %cst_30 = arith.constant 1.000000e+00 : f32
    %96 = vector.broadcast %cst_30 : f32 to vector<8x32xf32>
    %97 = arith.addf %96, %95 : vector<8x32xf32>
    %98 = arith.divf %96, %97 : vector<8x32xf32>
    %99 = vector.extract_strided_slice %92 {offsets = [0, 32], sizes = [8, 32], strides = [1, 1]} : vector<8x128xf32> to vector<8x32xf32>
    %100 = arith.negf %99 : vector<8x32xf32>
    %101 = math.exp %100 : vector<8x32xf32>
    %cst_31 = arith.constant 1.000000e+00 : f32
    %102 = vector.broadcast %cst_31 : f32 to vector<8x32xf32>
    %103 = arith.addf %102, %101 : vector<8x32xf32>
    %104 = arith.divf %102, %103 : vector<8x32xf32>
    %105 = vector.extract_strided_slice %92 {offsets = [0, 64], sizes = [8, 32], strides = [1, 1]} : vector<8x128xf32> to vector<8x32xf32>
    %106 = math.tanh %105 : vector<8x32xf32>
    %107 = vector.extract_strided_slice %92 {offsets = [0, 96], sizes = [8, 32], strides = [1, 1]} : vector<8x128xf32> to vector<8x32xf32>
    %108 = arith.negf %107 : vector<8x32xf32>
    %109 = math.exp %108 : vector<8x32xf32>
    %cst_32 = arith.constant 1.000000e+00 : f32
    %110 = vector.broadcast %cst_32 : f32 to vector<8x32xf32>
    %111 = arith.addf %110, %109 : vector<8x32xf32>
    %112 = arith.divf %110, %111 : vector<8x32xf32>
    %113 = arith.mulf %104, %84 : vector<8x32xf32>
    %114 = arith.mulf %98, %106 : vector<8x32xf32>
    %115 = arith.addf %113, %114 : vector<8x32xf32>
    %116 = math.tanh %115 : vector<8x32xf32>
    %117 = arith.mulf %112, %116 : vector<8x32xf32>
    %118 = arith.addi %8, %c2_i32 : i32
    %c8_i32_33 = arith.constant 8 : i32
    %119 = arith.cmpi slt, %118, %c8_i32_33 : i32
    %120 = arith.select %119, %117, %83 : vector<8x32xf32>
    %121 = arith.select %119, %115, %84 : vector<8x32xf32>
    %c3_i32 = arith.constant 3 : i32
    %122 = arith.index_cast %c3_i32 : i32 to index
    %c0_34 = arith.constant 0 : index
    %c0_35 = arith.constant 0 : index
    %123 = vector.load %arg1[%122, %c0_34, %c0_35] : memref<8x8x16xbf16, #tpu.memory_space<vmem>>, vector<1x8x16xbf16>
    %124 = vector.shape_cast %123 : vector<1x8x16xbf16> to vector<8x16xbf16>
    %cst_36 = arith.constant dense<0.000000e+00> : vector<8x128xf32>
    %125 = tpu.matmul %124, %3, %cst_36 {dimension_numbers = #tpu.dot_dimension_numbers<[1], [0], [0], [1], [0, 0, 1, 1], [], []>} : vector<8x16xbf16>, vector<16x128xbf16>, vector<8x128xf32> -> vector<8x128xf32>
    %126 = arith.truncf %120 : vector<8x32xf32> to vector<8x32xbf16>
    %cst_37 = arith.constant dense<0.000000e+00> : vector<8x128xf32>
    %127 = tpu.matmul %126, %4, %cst_37 {dimension_numbers = #tpu.dot_dimension_numbers<[1], [0], [0], [1], [0, 0, 1, 1], [], []>} : vector<8x32xbf16>, vector<32x128xbf16>, vector<8x128xf32> -> vector<8x128xf32>
    %128 = arith.addf %125, %127 : vector<8x128xf32>
    %129 = arith.addf %128, %7 : vector<8x128xf32>
    %130 = vector.extract_strided_slice %129 {offsets = [0, 0], sizes = [8, 32], strides = [1, 1]} : vector<8x128xf32> to vector<8x32xf32>
    %131 = arith.negf %130 : vector<8x32xf32>
    %132 = math.exp %131 : vector<8x32xf32>
    %cst_38 = arith.constant 1.000000e+00 : f32
    %133 = vector.broadcast %cst_38 : f32 to vector<8x32xf32>
    %134 = arith.addf %133, %132 : vector<8x32xf32>
    %135 = arith.divf %133, %134 : vector<8x32xf32>
    %136 = vector.extract_strided_slice %129 {offsets = [0, 32], sizes = [8, 32], strides = [1, 1]} : vector<8x128xf32> to vector<8x32xf32>
    %137 = arith.negf %136 : vector<8x32xf32>
    %138 = math.exp %137 : vector<8x32xf32>
    %cst_39 = arith.constant 1.000000e+00 : f32
    %139 = vector.broadcast %cst_39 : f32 to vector<8x32xf32>
    %140 = arith.addf %139, %138 : vector<8x32xf32>
    %141 = arith.divf %139, %140 : vector<8x32xf32>
    %142 = vector.extract_strided_slice %129 {offsets = [0, 64], sizes = [8, 32], strides = [1, 1]} : vector<8x128xf32> to vector<8x32xf32>
    %143 = math.tanh %142 : vector<8x32xf32>
    %144 = vector.extract_strided_slice %129 {offsets = [0, 96], sizes = [8, 32], strides = [1, 1]} : vector<8x128xf32> to vector<8x32xf32>
    %145 = arith.negf %144 : vector<8x32xf32>
    %146 = math.exp %145 : vector<8x32xf32>
    %cst_40 = arith.constant 1.000000e+00 : f32
    %147 = vector.broadcast %cst_40 : f32 to vector<8x32xf32>
    %148 = arith.addf %147, %146 : vector<8x32xf32>
    %149 = arith.divf %147, %148 : vector<8x32xf32>
    %150 = arith.mulf %141, %121 : vector<8x32xf32>
    %151 = arith.mulf %135, %143 : vector<8x32xf32>
    %152 = arith.addf %150, %151 : vector<8x32xf32>
    %153 = math.tanh %152 : vector<8x32xf32>
    %154 = arith.mulf %149, %153 : vector<8x32xf32>
    %155 = arith.addi %8, %c3_i32 : i32
    %c8_i32_41 = arith.constant 8 : i32
    %156 = arith.cmpi slt, %155, %c8_i32_41 : i32
    %157 = arith.select %156, %154, %120 : vector<8x32xf32>
    %158 = arith.select %156, %152, %121 : vector<8x32xf32>
    %c4_i32 = arith.constant 4 : i32
    %159 = arith.index_cast %c4_i32 : i32 to index
    %c0_42 = arith.constant 0 : index
    %c0_43 = arith.constant 0 : index
    %160 = vector.load %arg1[%159, %c0_42, %c0_43] : memref<8x8x16xbf16, #tpu.memory_space<vmem>>, vector<1x8x16xbf16>
    %161 = vector.shape_cast %160 : vector<1x8x16xbf16> to vector<8x16xbf16>
    %cst_44 = arith.constant dense<0.000000e+00> : vector<8x128xf32>
    %162 = tpu.matmul %161, %3, %cst_44 {dimension_numbers = #tpu.dot_dimension_numbers<[1], [0], [0], [1], [0, 0, 1, 1], [], []>} : vector<8x16xbf16>, vector<16x128xbf16>, vector<8x128xf32> -> vector<8x128xf32>
    %163 = arith.truncf %157 : vector<8x32xf32> to vector<8x32xbf16>
    %cst_45 = arith.constant dense<0.000000e+00> : vector<8x128xf32>
    %164 = tpu.matmul %163, %4, %cst_45 {dimension_numbers = #tpu.dot_dimension_numbers<[1], [0], [0], [1], [0, 0, 1, 1], [], []>} : vector<8x32xbf16>, vector<32x128xbf16>, vector<8x128xf32> -> vector<8x128xf32>
    %165 = arith.addf %162, %164 : vector<8x128xf32>
    %166 = arith.addf %165, %7 : vector<8x128xf32>
    %167 = vector.extract_strided_slice %166 {offsets = [0, 0], sizes = [8, 32], strides = [1, 1]} : vector<8x128xf32> to vector<8x32xf32>
    %168 = arith.negf %167 : vector<8x32xf32>
    %169 = math.exp %168 : vector<8x32xf32>
    %cst_46 = arith.constant 1.000000e+00 : f32
    %170 = vector.broadcast %cst_46 : f32 to vector<8x32xf32>
    %171 = arith.addf %170, %169 : vector<8x32xf32>
    %172 = arith.divf %170, %171 : vector<8x32xf32>
    %173 = vector.extract_strided_slice %166 {offsets = [0, 32], sizes = [8, 32], strides = [1, 1]} : vector<8x128xf32> to vector<8x32xf32>
    %174 = arith.negf %173 : vector<8x32xf32>
    %175 = math.exp %174 : vector<8x32xf32>
    %cst_47 = arith.constant 1.000000e+00 : f32
    %176 = vector.broadcast %cst_47 : f32 to vector<8x32xf32>
    %177 = arith.addf %176, %175 : vector<8x32xf32>
    %178 = arith.divf %176, %177 : vector<8x32xf32>
    %179 = vector.extract_strided_slice %166 {offsets = [0, 64], sizes = [8, 32], strides = [1, 1]} : vector<8x128xf32> to vector<8x32xf32>
    %180 = math.tanh %179 : vector<8x32xf32>
    %181 = vector.extract_strided_slice %166 {offsets = [0, 96], sizes = [8, 32], strides = [1, 1]} : vector<8x128xf32> to vector<8x32xf32>
    %182 = arith.negf %181 : vector<8x32xf32>
    %183 = math.exp %182 : vector<8x32xf32>
    %cst_48 = arith.constant 1.000000e+00 : f32
    %184 = vector.broadcast %cst_48 : f32 to vector<8x32xf32>
    %185 = arith.addf %184, %183 : vector<8x32xf32>
    %186 = arith.divf %184, %185 : vector<8x32xf32>
    %187 = arith.mulf %178, %158 : vector<8x32xf32>
    %188 = arith.mulf %172, %180 : vector<8x32xf32>
    %189 = arith.addf %187, %188 : vector<8x32xf32>
    %190 = math.tanh %189 : vector<8x32xf32>
    %191 = arith.mulf %186, %190 : vector<8x32xf32>
    %192 = arith.addi %8, %c4_i32 : i32
    %c8_i32_49 = arith.constant 8 : i32
    %193 = arith.cmpi slt, %192, %c8_i32_49 : i32
    %194 = arith.select %193, %191, %157 : vector<8x32xf32>
    %195 = arith.select %193, %189, %158 : vector<8x32xf32>
    %c5_i32 = arith.constant 5 : i32
    %196 = arith.index_cast %c5_i32 : i32 to index
    %c0_50 = arith.constant 0 : index
    %c0_51 = arith.constant 0 : index
    %197 = vector.load %arg1[%196, %c0_50, %c0_51] : memref<8x8x16xbf16, #tpu.memory_space<vmem>>, vector<1x8x16xbf16>
    %198 = vector.shape_cast %197 : vector<1x8x16xbf16> to vector<8x16xbf16>
    %cst_52 = arith.constant dense<0.000000e+00> : vector<8x128xf32>
    %199 = tpu.matmul %198, %3, %cst_52 {dimension_numbers = #tpu.dot_dimension_numbers<[1], [0], [0], [1], [0, 0, 1, 1], [], []>} : vector<8x16xbf16>, vector<16x128xbf16>, vector<8x128xf32> -> vector<8x128xf32>
    %200 = arith.truncf %194 : vector<8x32xf32> to vector<8x32xbf16>
    %cst_53 = arith.constant dense<0.000000e+00> : vector<8x128xf32>
    %201 = tpu.matmul %200, %4, %cst_53 {dimension_numbers = #tpu.dot_dimension_numbers<[1], [0], [0], [1], [0, 0, 1, 1], [], []>} : vector<8x32xbf16>, vector<32x128xbf16>, vector<8x128xf32> -> vector<8x128xf32>
    %202 = arith.addf %199, %201 : vector<8x128xf32>
    %203 = arith.addf %202, %7 : vector<8x128xf32>
    %204 = vector.extract_strided_slice %203 {offsets = [0, 0], sizes = [8, 32], strides = [1, 1]} : vector<8x128xf32> to vector<8x32xf32>
    %205 = arith.negf %204 : vector<8x32xf32>
    %206 = math.exp %205 : vector<8x32xf32>
    %cst_54 = arith.constant 1.000000e+00 : f32
    %207 = vector.broadcast %cst_54 : f32 to vector<8x32xf32>
    %208 = arith.addf %207, %206 : vector<8x32xf32>
    %209 = arith.divf %207, %208 : vector<8x32xf32>
    %210 = vector.extract_strided_slice %203 {offsets = [0, 32], sizes = [8, 32], strides = [1, 1]} : vector<8x128xf32> to vector<8x32xf32>
    %211 = arith.negf %210 : vector<8x32xf32>
    %212 = math.exp %211 : vector<8x32xf32>
    %cst_55 = arith.constant 1.000000e+00 : f32
    %213 = vector.broadcast %cst_55 : f32 to vector<8x32xf32>
    %214 = arith.addf %213, %212 : vector<8x32xf32>
    %215 = arith.divf %213, %214 : vector<8x32xf32>
    %216 = vector.extract_strided_slice %203 {offsets = [0, 64], sizes = [8, 32], strides = [1, 1]} : vector<8x128xf32> to vector<8x32xf32>
    %217 = math.tanh %216 : vector<8x32xf32>
    %218 = vector.extract_strided_slice %203 {offsets = [0, 96], sizes = [8, 32], strides = [1, 1]} : vector<8x128xf32> to vector<8x32xf32>
    %219 = arith.negf %218 : vector<8x32xf32>
    %220 = math.exp %219 : vector<8x32xf32>
    %cst_56 = arith.constant 1.000000e+00 : f32
    %221 = vector.broadcast %cst_56 : f32 to vector<8x32xf32>
    %222 = arith.addf %221, %220 : vector<8x32xf32>
    %223 = arith.divf %221, %222 : vector<8x32xf32>
    %224 = arith.mulf %215, %195 : vector<8x32xf32>
    %225 = arith.mulf %209, %217 : vector<8x32xf32>
    %226 = arith.addf %224, %225 : vector<8x32xf32>
    %227 = math.tanh %226 : vector<8x32xf32>
    %228 = arith.mulf %223, %227 : vector<8x32xf32>
    %229 = arith.addi %8, %c5_i32 : i32
    %c8_i32_57 = arith.constant 8 : i32
    %230 = arith.cmpi slt, %229, %c8_i32_57 : i32
    %231 = arith.select %230, %228, %194 : vector<8x32xf32>
    %232 = arith.select %230, %226, %195 : vector<8x32xf32>
    %c6_i32 = arith.constant 6 : i32
    %233 = arith.index_cast %c6_i32 : i32 to index
    %c0_58 = arith.constant 0 : index
    %c0_59 = arith.constant 0 : index
    %234 = vector.load %arg1[%233, %c0_58, %c0_59] : memref<8x8x16xbf16, #tpu.memory_space<vmem>>, vector<1x8x16xbf16>
    %235 = vector.shape_cast %234 : vector<1x8x16xbf16> to vector<8x16xbf16>
    %cst_60 = arith.constant dense<0.000000e+00> : vector<8x128xf32>
    %236 = tpu.matmul %235, %3, %cst_60 {dimension_numbers = #tpu.dot_dimension_numbers<[1], [0], [0], [1], [0, 0, 1, 1], [], []>} : vector<8x16xbf16>, vector<16x128xbf16>, vector<8x128xf32> -> vector<8x128xf32>
    %237 = arith.truncf %231 : vector<8x32xf32> to vector<8x32xbf16>
    %cst_61 = arith.constant dense<0.000000e+00> : vector<8x128xf32>
    %238 = tpu.matmul %237, %4, %cst_61 {dimension_numbers = #tpu.dot_dimension_numbers<[1], [0], [0], [1], [0, 0, 1, 1], [], []>} : vector<8x32xbf16>, vector<32x128xbf16>, vector<8x128xf32> -> vector<8x128xf32>
    %239 = arith.addf %236, %238 : vector<8x128xf32>
    %240 = arith.addf %239, %7 : vector<8x128xf32>
    %241 = vector.extract_strided_slice %240 {offsets = [0, 0], sizes = [8, 32], strides = [1, 1]} : vector<8x128xf32> to vector<8x32xf32>
    %242 = arith.negf %241 : vector<8x32xf32>
    %243 = math.exp %242 : vector<8x32xf32>
    %cst_62 = arith.constant 1.000000e+00 : f32
    %244 = vector.broadcast %cst_62 : f32 to vector<8x32xf32>
    %245 = arith.addf %244, %243 : vector<8x32xf32>
    %246 = arith.divf %244, %245 : vector<8x32xf32>
    %247 = vector.extract_strided_slice %240 {offsets = [0, 32], sizes = [8, 32], strides = [1, 1]} : vector<8x128xf32> to vector<8x32xf32>
    %248 = arith.negf %247 : vector<8x32xf32>
    %249 = math.exp %248 : vector<8x32xf32>
    %cst_63 = arith.constant 1.000000e+00 : f32
    %250 = vector.broadcast %cst_63 : f32 to vector<8x32xf32>
    %251 = arith.addf %250, %249 : vector<8x32xf32>
    %252 = arith.divf %250, %251 : vector<8x32xf32>
    %253 = vector.extract_strided_slice %240 {offsets = [0, 64], sizes = [8, 32], strides = [1, 1]} : vector<8x128xf32> to vector<8x32xf32>
    %254 = math.tanh %253 : vector<8x32xf32>
    %255 = vector.extract_strided_slice %240 {offsets = [0, 96], sizes = [8, 32], strides = [1, 1]} : vector<8x128xf32> to vector<8x32xf32>
    %256 = arith.negf %255 : vector<8x32xf32>
    %257 = math.exp %256 : vector<8x32xf32>
    %cst_64 = arith.constant 1.000000e+00 : f32
    %258 = vector.broadcast %cst_64 : f32 to vector<8x32xf32>
    %259 = arith.addf %258, %257 : vector<8x32xf32>
    %260 = arith.divf %258, %259 : vector<8x32xf32>
    %261 = arith.mulf %252, %232 : vector<8x32xf32>
    %262 = arith.mulf %246, %254 : vector<8x32xf32>
    %263 = arith.addf %261, %262 : vector<8x32xf32>
    %264 = math.tanh %263 : vector<8x32xf32>
    %265 = arith.mulf %260, %264 : vector<8x32xf32>
    %266 = arith.addi %8, %c6_i32 : i32
    %c8_i32_65 = arith.constant 8 : i32
    %267 = arith.cmpi slt, %266, %c8_i32_65 : i32
    %268 = arith.select %267, %265, %231 : vector<8x32xf32>
    %269 = arith.select %267, %263, %232 : vector<8x32xf32>
    %c7_i32 = arith.constant 7 : i32
    %270 = arith.index_cast %c7_i32 : i32 to index
    %c0_66 = arith.constant 0 : index
    %c0_67 = arith.constant 0 : index
    %271 = vector.load %arg1[%270, %c0_66, %c0_67] : memref<8x8x16xbf16, #tpu.memory_space<vmem>>, vector<1x8x16xbf16>
    %272 = vector.shape_cast %271 : vector<1x8x16xbf16> to vector<8x16xbf16>
    %cst_68 = arith.constant dense<0.000000e+00> : vector<8x128xf32>
    %273 = tpu.matmul %272, %3, %cst_68 {dimension_numbers = #tpu.dot_dimension_numbers<[1], [0], [0], [1], [0, 0, 1, 1], [], []>} : vector<8x16xbf16>, vector<16x128xbf16>, vector<8x128xf32> -> vector<8x128xf32>
    %274 = arith.truncf %268 : vector<8x32xf32> to vector<8x32xbf16>
    %cst_69 = arith.constant dense<0.000000e+00> : vector<8x128xf32>
    %275 = tpu.matmul %274, %4, %cst_69 {dimension_numbers = #tpu.dot_dimension_numbers<[1], [0], [0], [1], [0, 0, 1, 1], [], []>} : vector<8x32xbf16>, vector<32x128xbf16>, vector<8x128xf32> -> vector<8x128xf32>
    %276 = arith.addf %273, %275 : vector<8x128xf32>
    %277 = arith.addf %276, %7 : vector<8x128xf32>
    %278 = vector.extract_strided_slice %277 {offsets = [0, 0], sizes = [8, 32], strides = [1, 1]} : vector<8x128xf32> to vector<8x32xf32>
    %279 = arith.negf %278 : vector<8x32xf32>
    %280 = math.exp %279 : vector<8x32xf32>
    %cst_70 = arith.constant 1.000000e+00 : f32
    %281 = vector.broadcast %cst_70 : f32 to vector<8x32xf32>
    %282 = arith.addf %281, %280 : vector<8x32xf32>
    %283 = arith.divf %281, %282 : vector<8x32xf32>
    %284 = vector.extract_strided_slice %277 {offsets = [0, 32], sizes = [8, 32], strides = [1, 1]} : vector<8x128xf32> to vector<8x32xf32>
    %285 = arith.negf %284 : vector<8x32xf32>
    %286 = math.exp %285 : vector<8x32xf32>
    %cst_71 = arith.constant 1.000000e+00 : f32
    %287 = vector.broadcast %cst_71 : f32 to vector<8x32xf32>
    %288 = arith.addf %287, %286 : vector<8x32xf32>
    %289 = arith.divf %287, %288 : vector<8x32xf32>
    %290 = vector.extract_strided_slice %277 {offsets = [0, 64], sizes = [8, 32], strides = [1, 1]} : vector<8x128xf32> to vector<8x32xf32>
    %291 = math.tanh %290 : vector<8x32xf32>
    %292 = vector.extract_strided_slice %277 {offsets = [0, 96], sizes = [8, 32], strides = [1, 1]} : vector<8x128xf32> to vector<8x32xf32>
    %293 = arith.negf %292 : vector<8x32xf32>
    %294 = math.exp %293 : vector<8x32xf32>
    %cst_72 = arith.constant 1.000000e+00 : f32
    %295 = vector.broadcast %cst_72 : f32 to vector<8x32xf32>
    %296 = arith.addf %295, %294 : vector<8x32xf32>
    %297 = arith.divf %295, %296 : vector<8x32xf32>
    %298 = arith.mulf %289, %269 : vector<8x32xf32>
    %299 = arith.mulf %283, %291 : vector<8x32xf32>
    %300 = arith.addf %298, %299 : vector<8x32xf32>
    %301 = math.tanh %300 : vector<8x32xf32>
    %302 = arith.mulf %297, %301 : vector<8x32xf32>
    %303 = arith.addi %8, %c7_i32 : i32
    %c8_i32_73 = arith.constant 8 : i32
    %304 = arith.cmpi slt, %303, %c8_i32_73 : i32
    %305 = arith.select %304, %302, %268 : vector<8x32xf32>
    %306 = arith.select %304, %300, %269 : vector<8x32xf32>
    %c8_i32_74 = arith.constant 8 : i32
    %c0_75 = arith.constant 0 : index
    %c0_76 = arith.constant 0 : index
    %307 = vector.load %arg8[%c0_75, %c0_76] : memref<8x32xf32, #tpu.memory_space<vmem>>, vector<8x32xf32>
    tpu.vector_store %arg8[%c0_75, %c0_76], %305 {strides = array<i32>} : memref<8x32xf32, #tpu.memory_space<vmem>>, vector<8x32xf32>,
    %c0_77 = arith.constant 0 : index
    %c0_78 = arith.constant 0 : index
    %308 = vector.load %arg9[%c0_77, %c0_78] : memref<8x32xf32, #tpu.memory_space<vmem>>, vector<8x32xf32>
    tpu.vector_store %arg9[%c0_77, %c0_78], %306 {strides = array<i32>} : memref<8x32xf32, #tpu.memory_space<vmem>>, vector<8x32xf32>,
    %c0_i32_79 = arith.constant 0 : i32
    %309 = arith.cmpi eq, %arg0, %c0_i32_79 : i32
    %310 = arith.extui %309 : i1 to i32
    %c0_i32_80 = arith.constant 0 : i32
    %311 = arith.cmpi ne, %310, %c0_i32_80 : i32
    scf.if %311 {
      %312 = arith.truncf %305 : vector<8x32xf32> to vector<8x32xbf16>
      %c0_81 = arith.constant 0 : index
      %c0_82 = arith.constant 0 : index
      %313 = vector.load %arg5[%c0_81, %c0_82] : memref<32x8xbf16, #tpu.memory_space<vmem>>, vector<32x8xbf16>
      %cst_83 = arith.constant dense<0.000000e+00> : vector<8x8xf32>
      %314 = tpu.matmul %312, %313, %cst_83 {dimension_numbers = #tpu.dot_dimension_numbers<[1], [0], [0], [1], [0, 0, 1, 1], [], []>} : vector<8x32xbf16>, vector<32x8xbf16>, vector<8x8xf32> -> vector<8x8xf32>
      %c0_84 = arith.constant 0 : index
      %c0_85 = arith.constant 0 : index
      %315 = vector.load %arg6[%c0_84, %c0_85] : memref<1x8xf32, #tpu.memory_space<vmem>>, vector<1x8xf32>
      %316 = vector.broadcast %315 : vector<1x8xf32> to vector<8x8xf32>
      %317 = arith.addf %314, %316 : vector<8x8xf32>
      %c0_86 = arith.constant 0 : index
      %c0_87 = arith.constant 0 : index
      %c0_88 = arith.constant 0 : index
      %318 = vector.load %arg7[%c0_86, %c0_87, %c0_88] : memref<1x8x8xf32, #tpu.memory_space<vmem>>, vector<1x8x8xf32>
      %319 = vector.shape_cast %318 : vector<1x8x8xf32> to vector<8x8xf32>
      %320 = vector.shape_cast %317 : vector<8x8xf32> to vector<1x8x8xf32>
      tpu.vector_store %arg7[%c0_86, %c0_87, %c0_88], %320 {strides = array<i32>} : memref<1x8x8xf32, #tpu.memory_space<vmem>>, vector<1x8x8xf32>,
    } else {
    }
    return
  }
  func.func @transform_0(%arg0: i32) -> (i32, i32, i32) {
    %c0_i32 = arith.constant 0 : i32
    %c0_i32_0 = arith.constant 0 : i32
    %c0_i32_1 = arith.constant 0 : i32
    return %arg0, %c0_i32, %c0_i32_0 : i32, i32, i32
  }
  func.func @transform_1(%arg0: i32) -> (i32, i32) {
    %c0_i32 = arith.constant 0 : i32
    %c0_i32_0 = arith.constant 0 : i32
    %c0_i32_1 = arith.constant 0 : i32
    return %c0_i32, %c0_i32_0 : i32, i32
  }
  func.func @transform_2(%arg0: i32) -> (i32, i32) {
    %c0_i32 = arith.constant 0 : i32
    %c0_i32_0 = arith.constant 0 : i32
    %c0_i32_1 = arith.constant 0 : i32
    return %c0_i32, %c0_i32_0 : i32, i32
  }
  func.func @transform_3(%arg0: i32) -> (i32, i32) {
    %c0_i32 = arith.constant 0 : i32
    %c0_i32_0 = arith.constant 0 : i32
    %c0_i32_1 = arith.constant 0 : i32
    return %c0_i32, %c0_i32_0 : i32, i32
  }
  func.func @transform_4(%arg0: i32) -> (i32, i32) {
    %c0_i32 = arith.constant 0 : i32
    %c0_i32_0 = arith.constant 0 : i32
    %c0_i32_1 = arith.constant 0 : i32
    return %c0_i32, %c0_i32_0 : i32, i32
  }
  func.func @transform_5(%arg0: i32) -> (i32, i32) {
    %c0_i32 = arith.constant 0 : i32
    %c0_i32_0 = arith.constant 0 : i32
    %c0_i32_1 = arith.constant 0 : i32
    return %c0_i32, %c0_i32_0 : i32, i32
  }
  func.func @transform_6(%arg0: i32) -> (i32, i32, i32) {
    %c0_i32 = arith.constant 0 : i32
    %c0_i32_0 = arith.constant 0 : i32
    %c0_i32_1 = arith.constant 0 : i32
    %c0_i32_2 = arith.constant 0 : i32
    return %c0_i32, %c0_i32_0, %c0_i32_1 : i32, i32, i32
  }
}

</mosaic_0001>

<bundles_post_ra>
// kernel: tpu_custom_call.1
= control target key start
LH: loop header
LB: loop body
LE: loop exit
PB: predicated region body
PF: predicated region fallthrough
CT: control target
= control target key end

     0   :  { %11 = vsyncpa [#allocation5], 0  ;;  %s1744_s0 = inlined_call_operand.hbm [shape: bf16[8,8,16], index: 0, kind: input, shape index: {}]   ;;  %s1745_s1 = inlined_call_operand.vmem [shape: bf16[16,128], index: 1, kind: input, shape index: {}]   ;;  %s1746_s2 = inlined_call_operand.vmem [shape: bf16[32,128], index: 2, kind: input, shape index: {}]   ;;  %s1747_s3 = inlined_call_operand.vmem [shape: f32[1,128], index: 3, kind: input, shape index: {}]   ;;  %s1748_s4 = inlined_call_operand.vmem [shape: bf16[32,8], index: 4, kind: input, shape index: {}]   ;;  %s1749_s5 = inlined_call_operand.vmem [shape: f32[1,8], index: 5, kind: input, shape index: {}]   ;;  %s1750_s6 = inlined_call_operand.hbm [shape: f32[1,8,8], index: 6, kind: output, shape index: {}]  }
   0x1   :  { %12 = vsyncpa [#allocation6], 0  ;;  %s1497_s21 = smov [#allocation4]   ;;  %s1449_s25 = scalar_lea.hbm %s1744_s0, 512 }
   0x2   :  { %s18_s22 = sshll.u32 %s1497_s21, 4  ;;  %p1450_p0 = scmp.ne.s32.totalorder %s1744_s0, %s1449_s25  ;;  %s19_s22 = int_to_ptr.vmem [resolvable:$true] %s18_s22 }
   0x3   :  { %p1453_p1 = scmp.lt.u32.totalorder %s1449_s25, %s1744_s0 }
   0x5   :  { %p1455_p2 = pnand %p1453_p1, %p1450_p0 }
   0x7   :  { %1458 = shalt.err (!%p1455_p2)
}
   0x8   :  { %s1459_s30 = scalar_lea.vmem %s19_s22, 512  ;;  %p1464_p4 = scmp.lt.s32.totalorder %s19_s22, %s19_s22 }
   0x9   :  { %p1460_p3 = scmp.ne.s32.totalorder %s19_s22, %s1459_s30  ;;  %p1465_p5 = scmp.lt.s32.totalorder %s1459_s30, %s1459_s30 }
   0xb   :  { %p1466_p6 = por %p1465_p5, %p1464_p4 }
   0xd   :  { %p1467_p7 = pnand %p1466_p6, %p1460_p3 }
   0xf   :  { %1470 = shalt.err (!%p1467_p7)
}
  0x10   :  { %s1498_s7 = smov 64   ;;  %s1499_s8 = smov 4  }
  0x11   :  { %24 = dma.hbm_to_vmem [thread:$0]  %s1744_s0, 512, %s19_s22, [#allocation5], %s1498_s7, %s1498_s7, %s1499_s8  }
  0x12   :  { %1493 = dma.done.wait [#allocation5], 512  }
  0x13   :  { %1494 = vsyncadd [#allocation5], 4294966784  ;;  %vm43_vm0 = vcmask 261120   ;;  %v1500_v0 = vmov 0.0   ;;  %vm1501_vm1 = vmmov 0   ;;  %v1567_v1 = vld [vmem:[%s1746_s2] sm:$0xff]  }
  0x14   :  { %1252 = vmatprep.subr.bf16.mxu0 %v1500_v0  ;;  %1260 = vmatprep.subr.bf16.mxu1 %v1500_v0  ;;  %44 = vst.msk [vmem:[#allocation2] sm:$0xff] %vm43_vm0, %v1500_v0  ;;  %45 = vst.msk [vmem:[#allocation3] sm:$0xff] %vm43_vm0, %v1500_v0  ;;  %v1572_v2 = vld [vmem:[%s1745_s1] sm:$0xff]   ;;  %v1578_v3 = vld [vmem:[%s1746_s2 + $0x8] sm:$0xff]   ;;  %vm126_vm2 = vcmask 130048   ;;  %s1502_s16 = smov 32  }
  0x15   :  { %1262 = vmatprep.mubr.msk.bf16.mxu1 %vm1501_vm1, %v1500_v0  ;;  %1256 = vmatprep.mubr.msk.bf16.mxu0 %vm1501_vm1, %v1500_v0  ;;  %v62_v4 = vld [vmem:[#allocation4] sm:$0xf]  ;;  %v1600_v10 = vld [vmem:[%s1747_s3] ss:$0 sm:$0xff]  ;;  %v210_v30 = vld [vmem:[#allocation4 + $0x4] sm:$0xf] }
  0x16   :  { %1253 = vmatpush3.bf16.msra.mxu0 %v1567_v1  ;;  %1261 = vmatpush3.bf16.msra.mxu1 %v1572_v2  ;;  %v334_v56 = vld [vmem:[#allocation4 + $0x8] sm:$0xf]  ;;  %s1503_s20 = smov 96   ;;  %s1504_s22 = smov [#allocation7]   ;;  %vm1160_vm3 = vcmask 64512  }
  0x17   :  { %1254 = vmatprep.subr.bf16.mxu0 %v1500_v0  ;;  %1266 = vmatprep.subr.bf16.mxu1 %v1500_v0  ;;  %s1168_s23 = sshll.u32 %s1504_s22, 4  ;;  %s1169_s23 = int_to_ptr.vmem [resolvable:$true] %s1168_s23 }
  0x18   :  { %s1471_s24 = scalar_lea.vmem %s1169_s23, 128  ;;  %p1476_p9 = scmp.lt.s32.totalorder %s1169_s23, %s1169_s23 }
  0x19   :  { %1263 = vmatmul.mubr.msk.bf16.vlgmr.msra.gmra.mrb[0].mxu1 %vm126_vm2, %v62_v4  ;;  %p1472_p8 = scmp.ne.s32.totalorder %s1169_s23, %s1471_s24  ;;  %p1477_p10 = scmp.lt.s32.totalorder %s1471_s24, %s1471_s24 }
  0x1a   :  { %1255 = vmatpush3.bf16.msra.mxu0 %v1578_v3  ;;  %1267 = vmatpush3.bf16.msra.mxu1 %v1567_v1 }
  0x1b   :  { %v60_v5 = vld [vmem:[#allocation2] sm:$0xff]  ;;  %1274 = vmatprep.subr.bf16.mxu0 %v1500_v0  ;;  %1268 = vmatprep.subr.bf16.mxu1 %v1500_v0  ;;  %v61_v19 = vld [vmem:[#allocation3] sm:$0xff]  ;;  %p1478_p11 = por %p1477_p10, %p1476_p9 }
  0x1c   :  { %v63_v6 = vpack.c.bf16 %v60_v5, %v60_v5  ;;  %1270 = vmatprep.mubr.msk.bf16.mxu1 %vm1501_vm1, %v1500_v0 }
  0x1d   :  { %p1479_p12 = pnand %p1478_p11, %p1472_p8 }
  0x1e   :  { %1257 = vmatmul.mubr.msk.bf16.vlgmr.msra.gmra.mrb[0].mxu0 %vm43_vm0, %v63_v6  ;;  %1269 = vmatpush3.bf16.msra.mxu1 %v1578_v3 }
  0x1f   :  { %1275 = vmatpush3.bf16.msra.mxu0 %v1572_v2  ;;  %1276 = vmatprep.mubr.msk.bf16.mxu0 %vm1501_vm1, %v1500_v0 }
  0x20   :  { %1288 = vmatprep.subr.bf16.mxu0 %v1500_v0  ;;  %1280 = vmatprep.subr.bf16.mxu1 %v1500_v0 }
  0x26   :  { %1277 = vmatmul.mubr.msk.bf16.vlgmr.msra.gmra.mrb[4].mxu0 %vm126_vm2, %v210_v30 }
  0x27   :  { %1289 = vmatpush3.bf16.msra.mxu0 %v1572_v2  ;;  %1290 = vmatprep.mubr.msk.bf16.mxu0 %vm1501_vm1, %v1500_v0 }
  0x28   :  { %1302 = vmatprep.subr.bf16.mxu0 %v1500_v0 }
  0x2e   :  { %1291 = vmatmul.mubr.msk.bf16.vlgmr.msra.gmra.mrb[8].mxu0 %vm126_vm2, %v334_v56 }
  0x2f   :  { %1303 = vmatpush3.bf16.msra.mxu0 %v1572_v2  ;;  %1304 = vmatprep.mubr.msk.bf16.mxu0 %vm1501_vm1, %v1500_v0 }
  0x30   :  { %1316 = vmatprep.subr.bf16.mxu0 %v1500_v0 }
  0xec   :  { %v164_v7 = vpop.f32.mrb[0].mxu1 }
  0xed   :  { %v1264_v8 = vpop.f32.mrb[1].mxu1 }
  0xee   :  { %v167_v9 = vpop.f32.mrb[2].mxu1 }
  0xef   :  { %v1265_v12 = vpop.f32.mrb[3].mxu1 }
  0xf1   :  { %v114_v11 = vpop.f32.mrb[0].mxu0 }
  0xf2   :  { %v165_v13 = vadd.f32 %v164_v7, %v114_v11  ;;  %v1258_v14 = vpop.f32.mrb[1].mxu0 }
  0xf3   :  { %v117_v15 = vpop.f32.mrb[2].mxu0 }
  0xf4   :  { %v170_v16 = vadd.f32 %v1600_v10, %v165_v13  ;;  %v1259_v17 = vpop.f32.mrb[3].mxu0 }
  0xf6   :  { %1385 = vtanh.f32 %v170_v16  ;;  %v1183_v20 = vmul.f32 -1.442695, %v170_v16 }
  0xf8   :  { %1387 = vpow2.f32 %v1183_v20 }
  0xf9   :  { %v295_v35 = vpop.f32.mrb[4].mxu0 }
  0xfa   :  { %v1278_v36 = vpop.f32.mrb[5].mxu0 }
  0xfb   :  { %v298_v37 = vpop.f32.mrb[6].mxu0 }
  0xfc   :  { %v1279_v38 = vpop.f32.mrb[7].mxu0 }
 0x100   :  { %v1386_v18 = vpop.eup %1385 }
 0x101   :  { %184 = vrot.lane.b32.xlu0 %v1386_v18, %s1498_s7  ;;  %v419_v61 = vpop.f32.mrb[8].mxu0 }
 0x102   :  { %v1388_v21 = vpop.eup %1387  ;;  %v1292_v62 = vpop.f32.mrb[9].mxu0 }
 0x103   :  { %v174_v22 = vadd.f32 1.0, %v1388_v21  ;;  %v422_v63 = vpop.f32.mrb[10].mxu0 }
 0x104   :  { %v1293_v4 = vpop.f32.mrb[11].mxu0 }
 0x105   :  { %179 = vrot.lane.b32.xlu0 %v61_v19, %s1502_s16  ;;  %1389 = vrcp.f32 %v174_v22 }
 0x10f   :  { %v1390_v23 = vpop.eup %1389 }
 0x173   :  { %v185_v24 = vpop.permute.xlu0 %184 }
 0x174   :  { %v187_v25 = vmul.f32 %v1390_v23, %v185_v24 }
 0x176   :  { %189 = vrot.lane.b32.xlu1 %v187_v25, %s1502_s16 }
 0x177   :  { %v180_v26 = vpop.permute.xlu0 %179 }
 0x178   :  { %v182_v27 = vmul.f32 %v1390_v23, %v180_v26 }
 0x1e8   :  { %v190_v28 = vpop.permute.xlu1 %189 }
 0x1e9   :  { %v192_v29 = vadd.f32 %v190_v28, %v182_v27 }
 0x1eb   :  { %1391 = vtanh.f32 %v192_v29 }
 0x1f5   :  { %v1392_v31 = vpop.eup %1391 }
 0x1f6   :  { %195 = vrot.lane.b32.xlu1 %v1392_v31, %s1498_s7 }
 0x268   :  { %v196_v32 = vpop.permute.xlu1 %195 }
 0x269   :  { %v198_v33 = vmul.f32 %v1390_v23, %v196_v32  ;;  %v458_v23 = vld [vmem:[#allocation4 + $0xc] sm:$0xf] }
 0x26a   :  { %1305 = vmatmul.mubr.msk.bf16.vlgmr.msra.gmra.mrb[12].mxu0 %vm126_vm2, %v458_v23 }
 0x26b   :  { %v211_v34 = vpack.c.bf16 %v198_v33, %v198_v33  ;;  %1317 = vmatpush3.bf16.msra.mxu0 %v1572_v2  ;;  %1318 = vmatprep.mubr.msk.bf16.mxu0 %vm1501_vm1, %v1500_v0 }
 0x26c   :  { %1330 = vmatprep.subr.bf16.mxu0 %v1500_v0 }
 0x26d   :  { %213 = vrot.lane.b32.xlu0 %v211_v34, %s1502_s16 }
 0x2df   :  { %v214_v39 = vpop.permute.xlu0 %213 }
 0x2e0   :  { %1271 = vmatmul.mubr.msk.bf16.vlgmr.msra.gmra.mrb[4].mxu1 %vm43_vm0, %v214_v39 }
 0x2e1   :  { %1281 = vmatpush3.bf16.msra.mxu1 %v1567_v1  ;;  %1284 = vmatprep.mubr.msk.bf16.mxu1 %vm1501_vm1, %v1500_v0 }
 0x2e2   :  { %1282 = vmatprep.subr.bf16.mxu1 %v1500_v0 }
 0x2e5   :  { %1283 = vmatpush3.bf16.msra.mxu1 %v1578_v3 }
 0x2e6   :  { %1294 = vmatprep.subr.bf16.mxu1 %v1500_v0 }
 0x33d   :  { %v543_v28 = vpop.f32.mrb[12].mxu0 }
 0x3b3   :  { %v252_v40 = vpop.f32.mrb[4].mxu1 }
 0x3b4   :  { %v296_v41 = vadd.f32 %v295_v35, %v252_v40  ;;  %v1272_v42 = vpop.f32.mrb[5].mxu1 }
 0x3b5   :  { %v255_v43 = vpop.f32.mrb[6].mxu1 }
 0x3b6   :  { %v301_v44 = vadd.f32 %v1600_v10, %v296_v41  ;;  %v1273_v45 = vpop.f32.mrb[7].mxu1 }
 0x3b8   :  { %1393 = vtanh.f32 %v301_v44  ;;  %v1186_v47 = vmul.f32 -1.442695, %v301_v44 }
 0x3ba   :  { %1395 = vpow2.f32 %v1186_v47 }
 0x3c2   :  { %v1394_v46 = vpop.eup %1393 }
 0x3c3   :  { %311 = vrot.lane.b32.xlu1 %v1394_v46, %s1498_s7 }
 0x3c4   :  { %v1396_v48 = vpop.eup %1395 }
 0x3c5   :  { %v305_v49 = vadd.f32 1.0, %v1396_v48 }
 0x3c7   :  { %1397 = vrcp.f32 %v305_v49  ;;  %v582_v49 = vld [vmem:[#allocation4 + $0x10] sm:$0xf] }
 0x3c8   :  { %1319 = vmatmul.mubr.msk.bf16.vlgmr.msra.gmra.mrb[16].mxu0 %vm126_vm2, %v582_v49 }
 0x3c9   :  { %1331 = vmatpush3.bf16.msra.mxu0 %v1572_v2  ;;  %1332 = vmatprep.mubr.msk.bf16.mxu0 %vm1501_vm1, %v1500_v0 }
 0x3ca   :  { %1344 = vmatprep.subr.bf16.mxu0 %v1500_v0 }
 0x3d1   :  { %v1398_v50 = vpop.eup %1397 }
 0x3d2   :  { %v309_v53 = vmul.f32 %v1398_v50, %v192_v29  ;;  %v1306_v29 = vpop.f32.mrb[13].mxu0 }
 0x3d3   :  { %v546_v30 = vpop.f32.mrb[14].mxu0 }
 0x3d4   :  { %v1307_v31 = vpop.f32.mrb[15].mxu0 }
 0x435   :  { %v312_v51 = vpop.permute.xlu1 %311 }
 0x436   :  { %v314_v52 = vmul.f32 %v1398_v50, %v312_v51 }
 0x438   :  { %316 = vrot.lane.b32.xlu0 %v314_v52, %s1502_s16 }
 0x4aa   :  { %v317_v54 = vpop.permute.xlu0 %316 }
 0x4ab   :  { %v319_v55 = vadd.f32 %v317_v54, %v309_v53  ;;  %v667_v54 = vpop.f32.mrb[16].mxu0 }
 0x4ad   :  { %1399 = vtanh.f32 %v319_v55 }
 0x4b7   :  { %v1400_v57 = vpop.eup %1399 }
 0x4b8   :  { %322 = vrot.lane.b32.xlu1 %v1400_v57, %s1498_s7 }
 0x52a   :  { %v323_v58 = vpop.permute.xlu1 %322 }
 0x52b   :  { %v325_v59 = vmul.f32 %v1398_v50, %v323_v58 }
 0x52d   :  { %v335_v60 = vpack.c.bf16 %v325_v59, %v325_v59 }
 0x52f   :  { %337 = vrot.lane.b32.xlu0 %v335_v60, %s1502_s16 }
 0x5a1   :  { %v338_v5 = vpop.permute.xlu0 %337 }
 0x5a2   :  { %1285 = vmatmul.mubr.msk.bf16.vlgmr.msra.gmra.mrb[8].mxu1 %vm43_vm0, %v338_v5 }
 0x5a3   :  { %1295 = vmatpush3.bf16.msra.mxu1 %v1567_v1  ;;  %1298 = vmatprep.mubr.msk.bf16.mxu1 %vm1501_vm1, %v1500_v0 }
 0x5a4   :  { %1296 = vmatprep.subr.bf16.mxu1 %v1500_v0 }
 0x5a7   :  { %1297 = vmatpush3.bf16.msra.mxu1 %v1578_v3 }
 0x5a8   :  { %1308 = vmatprep.subr.bf16.mxu1 %v1500_v0 }
 0x675   :  { %v376_v6 = vpop.f32.mrb[8].mxu1 }
 0x676   :  { %v420_v7 = vadd.f32 %v419_v61, %v376_v6  ;;  %v1286_v8 = vpop.f32.mrb[9].mxu1 }
 0x677   :  { %v379_v9 = vpop.f32.mrb[10].mxu1 }
 0x678   :  { %v425_v11 = vadd.f32 %v1600_v10, %v420_v7  ;;  %v1287_v12 = vpop.f32.mrb[11].mxu1 }
 0x67a   :  { %1401 = vtanh.f32 %v425_v11  ;;  %v1189_v14 = vmul.f32 -1.442695, %v425_v11 }
 0x67c   :  { %1403 = vpow2.f32 %v1189_v14 }
 0x684   :  { %v1402_v13 = vpop.eup %1401 }
 0x685   :  { %435 = vrot.lane.b32.xlu1 %v1402_v13, %s1498_s7 }
 0x686   :  { %v1404_v15 = vpop.eup %1403 }
 0x687   :  { %v429_v16 = vadd.f32 1.0, %v1404_v15 }
 0x689   :  { %1405 = vrcp.f32 %v429_v16  ;;  %v706_v16 = vld [vmem:[#allocation4 + $0x14] sm:$0xf] }
 0x68a   :  { %1333 = vmatmul.mubr.msk.bf16.vlgmr.msra.gmra.mrb[20].mxu0 %vm126_vm2, %v706_v16 }
 0x68b   :  { %1345 = vmatpush3.bf16.msra.mxu0 %v1572_v2  ;;  %1346 = vmatprep.mubr.msk.bf16.mxu0 %vm1501_vm1, %v1500_v0 }
 0x68c   :  { %1358 = vmatprep.subr.bf16.mxu0 %v1500_v0 }
 0x693   :  { %v1406_v17 = vpop.eup %1405 }
 0x694   :  { %v433_v20 = vmul.f32 %v1406_v17, %v319_v55  ;;  %v1320_v55 = vpop.f32.mrb[17].mxu0 }
 0x695   :  { %v670_v56 = vpop.f32.mrb[18].mxu0 }
 0x696   :  { %v1321_v57 = vpop.f32.mrb[19].mxu0 }
 0x6f7   :  { %v436_v18 = vpop.permute.xlu1 %435 }
 0x6f8   :  { %v438_v19 = vmul.f32 %v1406_v17, %v436_v18 }
 0x6fa   :  { %440 = vrot.lane.b32.xlu0 %v438_v19, %s1502_s16 }
 0x76c   :  { %v441_v21 = vpop.permute.xlu0 %440 }
 0x76d   :  { %v443_v22 = vadd.f32 %v441_v21, %v433_v20  ;;  %v791_v21 = vpop.f32.mrb[20].mxu0 }
 0x76f   :  { %1407 = vtanh.f32 %v443_v22 }
 0x779   :  { %v1408_v24 = vpop.eup %1407 }
 0x77a   :  { %446 = vrot.lane.b32.xlu1 %v1408_v24, %s1498_s7 }
 0x7ec   :  { %v447_v25 = vpop.permute.xlu1 %446 }
 0x7ed   :  { %v449_v26 = vmul.f32 %v1406_v17, %v447_v25 }
 0x7ef   :  { %v459_v27 = vpack.c.bf16 %v449_v26, %v449_v26 }
 0x7f1   :  { %461 = vrot.lane.b32.xlu0 %v459_v27, %s1502_s16 }
 0x863   :  { %v462_v32 = vpop.permute.xlu0 %461 }
 0x864   :  { %1299 = vmatmul.mubr.msk.bf16.vlgmr.msra.gmra.mrb[12].mxu1 %vm43_vm0, %v462_v32 }
 0x865   :  { %1309 = vmatpush3.bf16.msra.mxu1 %v1567_v1  ;;  %1312 = vmatprep.mubr.msk.bf16.mxu1 %vm1501_vm1, %v1500_v0 }
 0x866   :  { %1310 = vmatprep.subr.bf16.mxu1 %v1500_v0 }
 0x869   :  { %1311 = vmatpush3.bf16.msra.mxu1 %v1578_v3 }
 0x86a   :  { %1322 = vmatprep.subr.bf16.mxu1 %v1500_v0 }
 0x937   :  { %v500_v33 = vpop.f32.mrb[12].mxu1 }
 0x938   :  { %v544_v34 = vadd.f32 %v543_v28, %v500_v33  ;;  %v1300_v35 = vpop.f32.mrb[13].mxu1 }
 0x939   :  { %v503_v36 = vpop.f32.mrb[14].mxu1 }
 0x93a   :  { %v549_v37 = vadd.f32 %v1600_v10, %v544_v34  ;;  %v1301_v38 = vpop.f32.mrb[15].mxu1 }
 0x93c   :  { %1409 = vtanh.f32 %v549_v37  ;;  %v1192_v40 = vmul.f32 -1.442695, %v549_v37 }
 0x93e   :  { %1411 = vpow2.f32 %v1192_v40 }
 0x946   :  { %v1410_v39 = vpop.eup %1409 }
 0x947   :  { %559 = vrot.lane.b32.xlu1 %v1410_v39, %s1498_s7 }
 0x948   :  { %v1412_v41 = vpop.eup %1411 }
 0x949   :  { %v553_v42 = vadd.f32 1.0, %v1412_v41 }
 0x94b   :  { %1413 = vrcp.f32 %v553_v42  ;;  %v830_v42 = vld [vmem:[#allocation4 + $0x18] sm:$0xf] }
 0x94c   :  { %1347 = vmatmul.mubr.msk.bf16.vlgmr.msra.gmra.mrb[24].mxu0 %vm126_vm2, %v830_v42 }
 0x94d   :  { %1359 = vmatpush3.bf16.msra.mxu0 %v1572_v2  ;;  %1360 = vmatprep.mubr.msk.bf16.mxu0 %vm1501_vm1, %v1500_v0 }
 0x955   :  { %v1414_v43 = vpop.eup %1413 }
 0x956   :  { %v557_v46 = vmul.f32 %v1414_v43, %v443_v22  ;;  %v1334_v22 = vpop.f32.mrb[21].mxu0 }
 0x957   :  { %v794_v23 = vpop.f32.mrb[22].mxu0 }
 0x958   :  { %v1335_v24 = vpop.f32.mrb[23].mxu0 }
 0x9b9   :  { %v560_v44 = vpop.permute.xlu1 %559 }
 0x9ba   :  { %v562_v45 = vmul.f32 %v1414_v43, %v560_v44 }
 0x9bc   :  { %564 = vrot.lane.b32.xlu0 %v562_v45, %s1502_s16 }
 0xa2e   :  { %v565_v47 = vpop.permute.xlu0 %564 }
 0xa2f   :  { %v567_v48 = vadd.f32 %v565_v47, %v557_v46  ;;  %v915_v47 = vpop.f32.mrb[24].mxu0 }
 0xa31   :  { %1415 = vtanh.f32 %v567_v48 }
 0xa3b   :  { %v1416_v50 = vpop.eup %1415 }
 0xa3c   :  { %570 = vrot.lane.b32.xlu1 %v1416_v50, %s1498_s7 }
 0xaae   :  { %v571_v51 = vpop.permute.xlu1 %570 }
 0xaaf   :  { %v573_v52 = vmul.f32 %v1414_v43, %v571_v51 }
 0xab1   :  { %v583_v53 = vpack.c.bf16 %v573_v52, %v573_v52 }
 0xab3   :  { %585 = vrot.lane.b32.xlu0 %v583_v53, %s1502_s16 }
 0xb25   :  { %v586_v58 = vpop.permute.xlu0 %585 }
 0xb26   :  { %1313 = vmatmul.mubr.msk.bf16.vlgmr.msra.gmra.mrb[16].mxu1 %vm43_vm0, %v586_v58 }
 0xb27   :  { %1323 = vmatpush3.bf16.msra.mxu1 %v1567_v1  ;;  %1326 = vmatprep.mubr.msk.bf16.mxu1 %vm1501_vm1, %v1500_v0 }
 0xb28   :  { %1324 = vmatprep.subr.bf16.mxu1 %v1500_v0 }
 0xb2b   :  { %1325 = vmatpush3.bf16.msra.mxu1 %v1578_v3 }
 0xb2c   :  { %1336 = vmatprep.subr.bf16.mxu1 %v1500_v0 }
 0xbf9   :  { %v624_v59 = vpop.f32.mrb[16].mxu1 }
 0xbfa   :  { %v668_v60 = vadd.f32 %v667_v54, %v624_v59  ;;  %v1314_v61 = vpop.f32.mrb[17].mxu1 }
 0xbfb   :  { %v627_v62 = vpop.f32.mrb[18].mxu1 }
 0xbfc   :  { %v673_v63 = vadd.f32 %v1600_v10, %v668_v60  ;;  %v1315_v4 = vpop.f32.mrb[19].mxu1 }
 0xbfe   :  { %1417 = vtanh.f32 %v673_v63  ;;  %v1195_v6 = vmul.f32 -1.442695, %v673_v63 }
 0xc00   :  { %1419 = vpow2.f32 %v1195_v6 }
 0xc08   :  { %v1418_v5 = vpop.eup %1417 }
 0xc09   :  { %683 = vrot.lane.b32.xlu1 %v1418_v5, %s1498_s7  ;;  %v954_v5 = vld [vmem:[#allocation4 + $0x1c] sm:$0xf] }
 0xc0a   :  { %v1420_v7 = vpop.eup %1419  ;;  %1361 = vmatmul.mubr.msk.bf16.vlgmr.msra.gmra.mrb[28].mxu0 %vm126_vm2, %v954_v5 }
 0xc0b   :  { %v677_v8 = vadd.f32 1.0, %v1420_v7 }
 0xc0d   :  { %1421 = vrcp.f32 %v677_v8 }
 0xc17   :  { %v1422_v9 = vpop.eup %1421 }
 0xc18   :  { %v681_v13 = vmul.f32 %v1422_v9, %v567_v48  ;;  %v1348_v48 = vpop.f32.mrb[25].mxu0 }
 0xc19   :  { %v918_v49 = vpop.f32.mrb[26].mxu0 }
 0xc1a   :  { %v1349_v50 = vpop.f32.mrb[27].mxu0 }
 0xc7b   :  { %v684_v11 = vpop.permute.xlu1 %683 }
 0xc7c   :  { %v686_v12 = vmul.f32 %v1422_v9, %v684_v11 }
 0xc7e   :  { %688 = vrot.lane.b32.xlu0 %v686_v12, %s1502_s16 }
 0xcdd   :  { %v1039_v11 = vpop.f32.mrb[28].mxu0 }
 0xcde   :  { %v1362_v12 = vpop.f32.mrb[29].mxu0 }
 0xcf0   :  { %v689_v14 = vpop.permute.xlu0 %688 }
 0xcf1   :  { %v691_v15 = vadd.f32 %v689_v14, %v681_v13  ;;  %v1042_v13 = vpop.f32.mrb[30].mxu0 }
 0xcf2   :  { %v1363_v14 = vpop.f32.mrb[31].mxu0 }
 0xcf3   :  { %1423 = vtanh.f32 %v691_v15 }
 0xcfd   :  { %v1424_v17 = vpop.eup %1423 }
 0xcfe   :  { %694 = vrot.lane.b32.xlu1 %v1424_v17, %s1498_s7 }
 0xd70   :  { %v695_v18 = vpop.permute.xlu1 %694 }
 0xd71   :  { %v697_v19 = vmul.f32 %v1422_v9, %v695_v18 }
 0xd73   :  { %v707_v20 = vpack.c.bf16 %v697_v19, %v697_v19 }
 0xd75   :  { %709 = vrot.lane.b32.xlu0 %v707_v20, %s1502_s16 }
 0xde7   :  { %v710_v25 = vpop.permute.xlu0 %709 }
 0xde8   :  { %1327 = vmatmul.mubr.msk.bf16.vlgmr.msra.gmra.mrb[20].mxu1 %vm43_vm0, %v710_v25 }
 0xde9   :  { %1337 = vmatpush3.bf16.msra.mxu1 %v1567_v1  ;;  %1340 = vmatprep.mubr.msk.bf16.mxu1 %vm1501_vm1, %v1500_v0 }
 0xdea   :  { %1338 = vmatprep.subr.bf16.mxu1 %v1500_v0 }
 0xded   :  { %1339 = vmatpush3.bf16.msra.mxu1 %v1578_v3 }
 0xdee   :  { %1350 = vmatprep.subr.bf16.mxu1 %v1500_v0 }
 0xebb   :  { %v748_v26 = vpop.f32.mrb[20].mxu1 }
 0xebc   :  { %v792_v27 = vadd.f32 %v791_v21, %v748_v26  ;;  %v1328_v28 = vpop.f32.mrb[21].mxu1 }
 0xebd   :  { %v751_v29 = vpop.f32.mrb[22].mxu1 }
 0xebe   :  { %v797_v30 = vadd.f32 %v1600_v10, %v792_v27  ;;  %v1329_v31 = vpop.f32.mrb[23].mxu1 }
 0xec0   :  { %1425 = vtanh.f32 %v797_v30  ;;  %v1198_v33 = vmul.f32 -1.442695, %v797_v30 }
 0xec2   :  { %1427 = vpow2.f32 %v1198_v33 }
 0xeca   :  { %v1426_v32 = vpop.eup %1425 }
 0xecb   :  { %807 = vrot.lane.b32.xlu1 %v1426_v32, %s1498_s7  ;;  %v1384_v32 = vld [vmem:[%s1748_s4 + $0x8] sm:$0xff]  }
 0xecc   :  { %v1428_v34 = vpop.eup %1427 }
 0xecd   :  { %v801_v35 = vadd.f32 1.0, %v1428_v34 }
 0xecf   :  { %1429 = vrcp.f32 %v801_v35 }
 0xed9   :  { %v1430_v36 = vpop.eup %1429 }
 0xeda   :  { %v805_v39 = vmul.f32 %v1430_v36, %v691_v15 }
 0xf3d   :  { %v808_v37 = vpop.permute.xlu1 %807 }
 0xf3e   :  { %v810_v38 = vmul.f32 %v1430_v36, %v808_v37 }
 0xf40   :  { %812 = vrot.lane.b32.xlu0 %v810_v38, %s1502_s16 }
 0xfb2   :  { %v813_v40 = vpop.permute.xlu0 %812 }
 0xfb3   :  { %v815_v41 = vadd.f32 %v813_v40, %v805_v39  ;;  %v1205_v39 = vld [vmem:[%s1749_s5] ss:$0 sm:$0xff] }
 0xfb5   :  { %1431 = vtanh.f32 %v815_v41 }
 0xfbf   :  { %v1432_v43 = vpop.eup %1431 }
 0xfc0   :  { %818 = vrot.lane.b32.xlu1 %v1432_v43, %s1498_s7 }
0x1032   :  { %v819_v44 = vpop.permute.xlu1 %818 }
0x1033   :  { %v821_v45 = vmul.f32 %v1430_v36, %v819_v44 }
0x1035   :  { %v831_v46 = vpack.c.bf16 %v821_v45, %v821_v45 }
0x1037   :  { %833 = vrot.lane.b32.xlu0 %v831_v46, %s1502_s16 }
0x10a9   :  { %v834_v51 = vpop.permute.xlu0 %833 }
0x10aa   :  { %1341 = vmatmul.mubr.msk.bf16.vlgmr.msra.gmra.mrb[24].mxu1 %vm43_vm0, %v834_v51 }
0x10ab   :  { %1351 = vmatpush3.bf16.msra.mxu1 %v1567_v1  ;;  %1354 = vmatprep.mubr.msk.bf16.mxu1 %vm1501_vm1, %v1500_v0 }
0x10ac   :  { %1352 = vmatprep.subr.bf16.mxu1 %v1500_v0 }
0x10af   :  { %1353 = vmatpush3.bf16.msra.mxu1 %v1578_v3 }
0x10b0   :  { %1364 = vmatprep.subr.bf16.mxu1 %v1500_v0 }
0x117d   :  { %v872_v2 = vpop.f32.mrb[24].mxu1 }
0x117e   :  { %v916_v52 = vadd.f32 %v915_v47, %v872_v2  ;;  %v1342_v53 = vpop.f32.mrb[25].mxu1 }
0x117f   :  { %v875_v54 = vpop.f32.mrb[26].mxu1 }
0x1180   :  { %v921_v55 = vadd.f32 %v1600_v10, %v916_v52  ;;  %v1343_v56 = vpop.f32.mrb[27].mxu1 }
0x1182   :  { %1433 = vtanh.f32 %v921_v55  ;;  %v1201_v1 = vmul.f32 -1.442695, %v921_v55 }
0x1184   :  { %1435 = vpow2.f32 %v1201_v1 }
0x118c   :  { %v1434_v57 = vpop.eup %1433 }
0x118d   :  { %931 = vrot.lane.b32.xlu1 %v1434_v57, %s1498_s7 }
0x118e   :  { %v1436_v58 = vpop.eup %1435 }
0x118f   :  { %v925_v59 = vadd.f32 1.0, %v1436_v58 }
0x1191   :  { %1437 = vrcp.f32 %v925_v59 }
0x119b   :  { %v1438_v60 = vpop.eup %1437 }
0x119c   :  { %v929_v62 = vmul.f32 %v1438_v60, %v815_v41 }
0x11ff   :  { %v932_v3 = vpop.permute.xlu1 %931 }
0x1200   :  { %v934_v61 = vmul.f32 %v1438_v60, %v932_v3 }
0x1202   :  { %936 = vrot.lane.b32.xlu0 %v934_v61, %s1502_s16 }
0x1274   :  { %v937_v63 = vpop.permute.xlu0 %936 }
0x1275   :  { %v939_v4 = vadd.f32 %v937_v63, %v929_v62 }
0x1277   :  { %1439 = vtanh.f32 %v939_v4 }
0x1281   :  { %v1440_v6 = vpop.eup %1439 }
0x1282   :  { %942 = vrot.lane.b32.xlu1 %v1440_v6, %s1498_s7 }
0x12f4   :  { %v943_v7 = vpop.permute.xlu1 %942 }
0x12f5   :  { %v945_v8 = vmul.f32 %v1438_v60, %v943_v7 }
0x12f7   :  { %v955_v9 = vpack.c.bf16 %v945_v8, %v945_v8 }
0x12f9   :  { %957 = vrot.lane.b32.xlu0 %v955_v9, %s1502_s16 }
0x136b   :  { %v958_v15 = vpop.permute.xlu0 %957 }
0x136c   :  { %1355 = vmatmul.mubr.msk.bf16.vlgmr.msra.gmra.mrb[28].mxu1 %vm43_vm0, %v958_v15 }
0x136d   :  { %1368 = vmatprep.mubr.msk.bf16.mxu1 %vm1501_vm1, %v1500_v0 }
0x143f   :  { %v996_v16 = vpop.f32.mrb[28].mxu1 }
0x1440   :  { %v1040_v17 = vadd.f32 %v1039_v11, %v996_v16  ;;  %v1356_v18 = vpop.f32.mrb[29].mxu1 }
0x1441   :  { %v999_v19 = vpop.f32.mrb[30].mxu1 }
0x1442   :  { %v1045_v20 = vadd.f32 %v1600_v10, %v1040_v17  ;;  %v1357_v21 = vpop.f32.mrb[31].mxu1  ;;  %v1383_v10 = vld [vmem:[%s1748_s4] sm:$0xff]  }
0x1443   :  { %1365 = vmatpush3.bf16.msra.mxu1 %v1383_v10 }
0x1444   :  { %1441 = vtanh.f32 %v1045_v20  ;;  %v1204_v23 = vmul.f32 -1.442695, %v1045_v20  ;;  %1366 = vmatprep.subr.bf16.mxu1 %v1500_v0 }
0x1446   :  { %1443 = vpow2.f32 %v1204_v23 }
0x1447   :  { %1367 = vmatpush3.bf16.msra.mxu1 %v1384_v32 }
0x144e   :  { %v1442_v22 = vpop.eup %1441 }
0x144f   :  { %1055 = vrot.lane.b32.xlu1 %v1442_v22, %s1498_s7 }
0x1450   :  { %v1444_v24 = vpop.eup %1443 }
0x1451   :  { %v1049_v25 = vadd.f32 1.0, %v1444_v24 }
0x1453   :  { %1445 = vrcp.f32 %v1049_v25 }
0x145d   :  { %v1446_v26 = vpop.eup %1445 }
0x145e   :  { %v1053_v29 = vmul.f32 %v1446_v26, %v939_v4 }
0x14c1   :  { %v1056_v27 = vpop.permute.xlu1 %1055 }
0x14c2   :  { %v1058_v28 = vmul.f32 %v1446_v26, %v1056_v27 }
0x14c4   :  { %1060 = vrot.lane.b32.xlu0 %v1058_v28, %s1502_s16 }
0x1536   :  { %v1061_v30 = vpop.permute.xlu0 %1060 }
0x1537   :  { %v1063_v31 = vadd.f32 %v1061_v30, %v1053_v29 }
0x1539   :  { %1447 = vtanh.f32 %v1063_v31 }
0x1543   :  { %v1448_v33 = vpop.eup %1447 }
0x1544   :  { %1066 = vrot.lane.b32.xlu1 %v1448_v33, %s1498_s7 }
0x15b6   :  { %v1067_v34 = vpop.permute.xlu1 %1066 }
0x15b7   :  { %v1069_v35 = vmul.f32 %v1446_v26, %v1067_v34 }
0x15b9   :  { %v1090_v36 = vpack.c.bf16 %v1069_v35, %v1069_v35  ;;  %1078 = vrot.lane.b32.xlu1 %v1069_v35, %s1502_s16 }
0x15bb   :  { %1103 = vrot.lane.b32.xlu0 %v1090_v36, %s1502_s16 }
0x15bf   :  { %1083 = vrot.lane.b32.xlu0 %v1063_v31, %s1503_s20 }
0x162b   :  { %v1079_v37 = vpop.permute.xlu1 %1078 }
0x162c   :  { %1081 = vst.msk [vmem:[#allocation2] sm:$0xff] %vm43_vm0, %v1079_v37 }
0x162d   :  { %v1104_v38 = vpop.permute.xlu0 %1103 }
0x162e   :  { %1369 = vmatmul.mubr.msk.bf16.vlgmr.msra.gmra.mrb[32].mxu1 %vm43_vm0, %v1104_v38 }
0x1631   :  { %v1084_v0 = vpop.permute.xlu0 %1083 }
0x1632   :  { %1086 = vst.msk [vmem:[#allocation3] sm:$0xff] %vm43_vm0, %v1084_v0 }
0x1701   :  { %v1154_v40 = vpop.f32.mrb[32].mxu1 }
0x1702   :  { %v1155_v41 = vadd.f32 %v1205_v39, %v1154_v40  ;;  %v1370_v42 = vpop.f32.mrb[33].mxu1 }
0x1703   :  { %v1157_v43 = vpop.f32.mrb[34].mxu1 }
0x1704   :  { %v1371_v44 = vpop.f32.mrb[35].mxu1  ;;  %1161 = vst.msk [vmem:[#allocation7] sm:$0xff] %vm1160_vm3, %v1155_v41 }
0x1705   :  { %1482 = shalt.err (!%p1479_p12)
}
0x1706   :  { %s1483_s5 = scalar_lea.hbm %s1750_s6, 128 }
0x1707   :  { %p1484_p13 = scmp.ne.s32.totalorder %s1750_s6, %s1483_s5  ;;  %p1487_p0 = scmp.lt.u32.totalorder %s1483_s5, %s1750_s6 }
0x1709   :  { %p1489_p1 = pnand %p1487_p0, %p1484_p13 }
0x170b   :  { %1492 = shalt.err (!%p1489_p1)
}
0x170c   :  { %1171 = dma.vmem_to_hbm [thread:$0]  %s1169_s23, 128, %s1750_s6, [#allocation6]  }
0x170d   :  { %1495 = dma.done.wait [#allocation6], 128  }
0x170e   :  { %1496 = vsyncadd [#allocation6], 4294967168 }
0x170f   :  { %1175 = vsyncpa [#allocation5], 1 }
0x1710   :  { %1176 = vsyncpa [#allocation6], 1 }

</bundles_post_ra>
